<compile_context>
chip_gen: v7x
topology: tpu7x:2x2x1
jax: 0.10.0
libtpu: 0.0.40
codegen_flags: <defaults>
</compile_context>

<pallas_src>
import functools

import jax
import jax.numpy as jnp
from jax.experimental import pallas as pl
from jax.experimental.pallas import tpu as pltpu


def _fused_kernel(x_ref, w_ref, b_ref, res_ref, gamma_ref, beta_ref, o_ref,
                  *, eps):
    # x_ref:      (TM, Din)   hidden_states tile (input dtype, e.g. f32)
    # w_ref:      (Din, Dout) bf16 dense weight (resident across the grid)
    # b_ref:      (1, Dout)   f32 dense bias
    # res_ref:    (TM, Dout)  input_tensor (residual) tile, any float dtype
    # gamma/beta: (1, Dout)   f32 LayerNorm affine params

    # Cast x to the MXU-native matmul dtype in-register (no HBM bf16 copy);
    # accumulate in f32 on the MXU.
    x = x_ref[...].astype(w_ref.dtype)
    h = jnp.dot(x, w_ref[...], preferred_element_type=jnp.float32)

    # dropout == identity (inference mode)

    # bias + residual in one VPU pass, LayerNorm in f32 over the last dim.
    y = h + res_ref[...].astype(jnp.float32) + b_ref[...]

    # One-pass statistics: the two row reductions (E[y], E[y^2]) can issue
    # back-to-back into the XLU instead of waiting on a centered tile.
    mean = jnp.mean(y, axis=-1, keepdims=True)
    mean_sq = jnp.mean(y * y, axis=-1, keepdims=True)
    var = jnp.maximum(mean_sq - mean * mean, 0.0)
    inv = jax.lax.rsqrt(var + eps)           # EUP slot, effectively free

    o_ref[...] = ((y - mean) * inv * gamma_ref[...]
                  + beta_ref[...]).astype(o_ref.dtype)


def self_attention_output(hidden_states, input_tensor, w, b, gamma, beta, *,
                          eps=1e-12, tile_m=512, matmul_dtype=jnp.bfloat16,
                          out_dtype=None):
    """Fused dense + (inference) dropout + residual + LayerNorm.

    hidden_states: [..., Din], input_tensor: [..., Dout],
    w: [Din, Dout], b/gamma/beta: [Dout].
    """
    din = hidden_states.shape[-1]
    dout = w.shape[1]
    out_shape_nd = hidden_states.shape[:-1] + (dout,)
    out_dtype = hidden_states.dtype if out_dtype is None else out_dtype

    hs = hidden_states.reshape(-1, din)     # no pad, no dtype cast: zero
    res = input_tensor.reshape(-1, dout)    # extra HBM passes in the wrapper
    t = hs.shape[0]

    # Adaptive tile: guarantee >= 2 grid steps when possible so both v7x
    # TensorCores get work on the "parallel" token axis for short sequences;
    # keep sublane (multiple-of-8) alignment for the second-to-last block dim.
    if t <= tile_m:
        tile_m = max(8, ((pl.cdiv(t, 2) + 7) // 8) * 8)
    grid_m = pl.cdiv(t, tile_m)             # ragged last tile handled by Pallas

    # Grid-invariant operands (constant index_map -> resident in VMEM).
    w2 = w.astype(matmul_dtype)             # tiny one-time cast; MXU-native
    b2 = b.reshape(1, dout).astype(jnp.float32)
    g2 = gamma.reshape(1, dout).astype(jnp.float32)
    bt2 = beta.reshape(1, dout).astype(jnp.float32)

    # VMEM budget: double-buffered x / res / out tiles + resident W + params
    # + f32 epilogue temporaries.  Capped at 56 MiB so it stays below v7x's
    # 64 MiB physical VMEM with headroom for Mosaic-internal scratch.
    x_bytes = jnp.dtype(hs.dtype).itemsize
    res_bytes = jnp.dtype(res.dtype).itemsize
    out_bytes = jnp.dtype(out_dtype).itemsize
    w_bytes = jnp.dtype(matmul_dtype).itemsize
    vmem_needed = (2 * tile_m * din * x_bytes      # x tiles
                   + 2 * din * dout * w_bytes      # W (resident, dbl-buffered)
                   + 2 * tile_m * dout * res_bytes # residual tiles
                   + 2 * tile_m * dout * out_bytes # output tiles
                   + 4 * tile_m * dout * 4         # f32 epilogue temps
                   + 6 * dout * 4)                 # bias / gamma / beta
    vmem_limit = min(max(int(vmem_needed * 1.25) + (4 << 20), 32 << 20),
                     56 << 20)

    kernel = functools.partial(_fused_kernel, eps=eps)

    out = pl.pallas_call(
        kernel,
        out_shape=jax.ShapeDtypeStruct((t, dout), out_dtype),
        grid=(grid_m,),
        in_specs=[
            pl.BlockSpec((tile_m, din), lambda i: (i, 0)),   # hidden_states
            pl.BlockSpec((din, dout), lambda i: (0, 0)),     # W (resident)
            pl.BlockSpec((1, dout), lambda i: (0, 0)),       # bias
            pl.BlockSpec((tile_m, dout), lambda i: (i, 0)),  # residual
            pl.BlockSpec((1, dout), lambda i: (0, 0)),       # gamma
            pl.BlockSpec((1, dout), lambda i: (0, 0)),       # beta
        ],
        out_specs=pl.BlockSpec((tile_m, dout), lambda i: (i, 0)),
        compiler_params=pltpu.CompilerParams(
            dimension_semantics=("parallel",),
            vmem_limit_bytes=vmem_limit,
        ),
    )(hs, w2, b2, res, g2, bt2)

    return out.reshape(out_shape_nd)


if __name__ == "__main__":
    # Small shapes consistent with the module: batch=2, seq=8, hidden=32.
    B, S, D_in, D_out = 2, 8, 32, 32
    eps = 1e-12

    key = jax.random.PRNGKey(0)
    k_hs, k_res, k_w, k_b = jax.random.split(key, 4)

    hidden_states = jax.random.normal(k_hs, (B, S, D_in), dtype=jnp.float32)
    input_tensor = jax.random.normal(k_res, (B, S, D_out), dtype=jnp.float32)

    # Deterministic parameter init (Linear + LayerNorm shapes from __init__).
    w = jax.random.normal(k_w, (D_in, D_out), dtype=jnp.float32) * 0.02
    b = jax.random.normal(k_b, (D_out,), dtype=jnp.float32) * 0.02
    gamma = jnp.ones((D_out,), dtype=jnp.float32)
    beta = jnp.zeros((D_out,), dtype=jnp.float32)

    out = self_attention_output(hidden_states, input_tensor, w, b, gamma,
                                beta, eps=eps)
    jax.block_until_ready(out)

    # Pure-JAX reference with the same bf16 quantization of the matmul
    # operands (the kernel accumulates in f32 and does the LayerNorm in f32).
    hs2 = hidden_states.reshape(B * S, D_in)
    res2 = input_tensor.reshape(B * S, D_out)
    hs_q = hs2.astype(jnp.bfloat16).astype(jnp.float32)
    w_q = w.astype(jnp.bfloat16).astype(jnp.float32)
    ref = hs_q @ w_q + b + res2
    mu = ref.mean(-1, keepdims=True)
    var = ((ref - mu) ** 2).mean(-1, keepdims=True)
    ref = (ref - mu) / jnp.sqrt(var + eps) * gamma + beta
    ref = ref.reshape(B, S, D_out)

    assert out.shape == (B, S, D_out)
    assert jnp.allclose(out, ref, atol=1e-3, rtol=1e-3), "mismatch vs reference"

    print("KERNEL_OK")
</pallas_src>

<mosaic_0001>
module attributes {stable_mosaic.version = 11 : i64} {
  func.func @_fused_kernel(%arg0: i32, %arg1: memref<8x32xf32, #tpu.memory_space<vmem>>, %arg2: memref<32x32xbf16, #tpu.memory_space<vmem>>, %arg3: memref<1x32xf32, #tpu.memory_space<vmem>>, %arg4: memref<8x32xf32, #tpu.memory_space<vmem>>, %arg5: memref<1x32xf32, #tpu.memory_space<vmem>>, %arg6: memref<1x32xf32, #tpu.memory_space<vmem>>, %arg7: memref<8x32xf32, #tpu.memory_space<vmem>>) attributes {dimension_semantics = [#tpu.dimension_semantics<parallel>], iteration_bounds = array<i64: 2>, scalar_prefetch = 0 : i64, scratch_operands = 0 : i64, tpu.core_type = #tpu.core_type<tc>, window_params = [{transform_indices = @transform_0, window_bounds = array<i64: 8, 32>}, {pipeline_mode = #tpu.pipeline_mode<synchronous>, transform_indices = @transform_1, window_bounds = array<i64: 32, 32>}, {pipeline_mode = #tpu.pipeline_mode<synchronous>, transform_indices = @transform_2, window_bounds = array<i64: 1, 32>}, {transform_indices = @transform_3, window_bounds = array<i64: 8, 32>}, {pipeline_mode = #tpu.pipeline_mode<synchronous>, transform_indices = @transform_4, window_bounds = array<i64: 1, 32>}, {pipeline_mode = #tpu.pipeline_mode<synchronous>, transform_indices = @transform_5, window_bounds = array<i64: 1, 32>}, {transform_indices = @transform_6, window_bounds = array<i64: 8, 32>}]} {
    %c0 = arith.constant 0 : index
    %c0_0 = arith.constant 0 : index
    %0 = vector.load %arg1[%c0, %c0_0] : memref<8x32xf32, #tpu.memory_space<vmem>>, vector<8x32xf32>
    %1 = arith.truncf %0 : vector<8x32xf32> to vector<8x32xbf16>
    %c0_1 = arith.constant 0 : index
    %c0_2 = arith.constant 0 : index
    %2 = vector.load %arg2[%c0_1, %c0_2] : memref<32x32xbf16, #tpu.memory_space<vmem>>, vector<32x32xbf16>
    %cst = arith.constant dense<0.000000e+00> : vector<8x32xf32>
    %3 = tpu.matmul %1, %2, %cst {dimension_numbers = #tpu.dot_dimension_numbers<[1], [0], [0], [1], [0, 0, 1, 1], [], []>} : vector<8x32xbf16>, vector<32x32xbf16>, vector<8x32xf32> -> vector<8x32xf32>
    %c0_3 = arith.constant 0 : index
    %c0_4 = arith.constant 0 : index
    %4 = vector.load %arg4[%c0_3, %c0_4] : memref<8x32xf32, #tpu.memory_space<vmem>>, vector<8x32xf32>
    %5 = arith.addf %3, %4 : vector<8x32xf32>
    %c0_5 = arith.constant 0 : index
    %c0_6 = arith.constant 0 : index
    %6 = vector.load %arg3[%c0_5, %c0_6] : memref<1x32xf32, #tpu.memory_space<vmem>>, vector<1x32xf32>
    %7 = vector.broadcast %6 : vector<1x32xf32> to vector<8x32xf32>
    %8 = arith.addf %5, %7 : vector<8x32xf32>
    %cst_7 = arith.constant dense<0.000000e+00> : vector<8xf32>
    %9 = vector.multi_reduction <add>, %8, %cst_7 [1] : vector<8x32xf32> to vector<8xf32>
    %10 = vector.shape_cast %9 : vector<8xf32> to vector<8x1xf32>
    %cst_8 = arith.constant 3.200000e+01 : f32
    %11 = vector.broadcast %cst_8 : f32 to vector<8x1xf32>
    %12 = arith.divf %10, %11 : vector<8x1xf32>
    %13 = arith.mulf %8, %8 : vector<8x32xf32>
    %cst_9 = arith.constant dense<0.000000e+00> : vector<8xf32>
    %14 = vector.multi_reduction <add>, %13, %cst_9 [1] : vector<8x32xf32> to vector<8xf32>
    %15 = vector.shape_cast %14 : vector<8xf32> to vector<8x1xf32>
    %cst_10 = arith.constant 3.200000e+01 : f32
    %16 = vector.broadcast %cst_10 : f32 to vector<8x1xf32>
    %17 = arith.divf %15, %16 : vector<8x1xf32>
    %18 = arith.mulf %12, %12 : vector<8x1xf32>
    %19 = arith.subf %17, %18 : vector<8x1xf32>
    %cst_11 = arith.constant 0.000000e+00 : f32
    %20 = vector.broadcast %cst_11 : f32 to vector<8x1xf32>
    %21 = arith.maximumf %19, %20 : vector<8x1xf32>
    %cst_12 = arith.constant 9.99999996E-13 : f32
    %22 = vector.broadcast %cst_12 : f32 to vector<8x1xf32>
    %23 = arith.addf %21, %22 : vector<8x1xf32>
    %24 = math.rsqrt %23 : vector<8x1xf32>
    %25 = vector.broadcast %12 : vector<8x1xf32> to vector<8x32xf32>
    %26 = arith.subf %8, %25 : vector<8x32xf32>
    %27 = vector.broadcast %24 : vector<8x1xf32> to vector<8x32xf32>
    %28 = arith.mulf %26, %27 : vector<8x32xf32>
    %c0_13 = arith.constant 0 : index
    %c0_14 = arith.constant 0 : index
    %29 = vector.load %arg5[%c0_13, %c0_14] : memref<1x32xf32, #tpu.memory_space<vmem>>, vector<1x32xf32>
    %30 = vector.broadcast %29 : vector<1x32xf32> to vector<8x32xf32>
    %31 = arith.mulf %28, %30 : vector<8x32xf32>
    %c0_15 = arith.constant 0 : index
    %c0_16 = arith.constant 0 : index
    %32 = vector.load %arg6[%c0_15, %c0_16] : memref<1x32xf32, #tpu.memory_space<vmem>>, vector<1x32xf32>
    %33 = vector.broadcast %32 : vector<1x32xf32> to vector<8x32xf32>
    %34 = arith.addf %31, %33 : vector<8x32xf32>
    %c0_17 = arith.constant 0 : index
    %c0_18 = arith.constant 0 : index
    %35 = vector.load %arg7[%c0_17, %c0_18] : memref<8x32xf32, #tpu.memory_space<vmem>>, vector<8x32xf32>
    tpu.vector_store %arg7[%c0_17, %c0_18], %34 {strides = array<i32>} : memref<8x32xf32, #tpu.memory_space<vmem>>, vector<8x32xf32>,
    return
  }
  func.func @transform_0(%arg0: i32) -> (i32, i32) {
    %c0_i32 = arith.constant 0 : i32
    %c0_i32_0 = arith.constant 0 : i32
    return %arg0, %c0_i32 : i32, i32
  }
  func.func @transform_1(%arg0: i32) -> (i32, i32) {
    %c0_i32 = arith.constant 0 : i32
    %c0_i32_0 = arith.constant 0 : i32
    %c0_i32_1 = arith.constant 0 : i32
    return %c0_i32, %c0_i32_0 : i32, i32
  }
  func.func @transform_2(%arg0: i32) -> (i32, i32) {
    %c0_i32 = arith.constant 0 : i32
    %c0_i32_0 = arith.constant 0 : i32
    %c0_i32_1 = arith.constant 0 : i32
    return %c0_i32, %c0_i32_0 : i32, i32
  }
  func.func @transform_3(%arg0: i32) -> (i32, i32) {
    %c0_i32 = arith.constant 0 : i32
    %c0_i32_0 = arith.constant 0 : i32
    return %arg0, %c0_i32 : i32, i32
  }
  func.func @transform_4(%arg0: i32) -> (i32, i32) {
    %c0_i32 = arith.constant 0 : i32
    %c0_i32_0 = arith.constant 0 : i32
    %c0_i32_1 = arith.constant 0 : i32
    return %c0_i32, %c0_i32_0 : i32, i32
  }
  func.func @transform_5(%arg0: i32) -> (i32, i32) {
    %c0_i32 = arith.constant 0 : i32
    %c0_i32_0 = arith.constant 0 : i32
    %c0_i32_1 = arith.constant 0 : i32
    return %c0_i32, %c0_i32_0 : i32, i32
  }
  func.func @transform_6(%arg0: i32) -> (i32, i32) {
    %c0_i32 = arith.constant 0 : i32
    %c0_i32_0 = arith.constant 0 : i32
    return %arg0, %c0_i32 : i32, i32
  }
}

</mosaic_0001>

<bundles_post_ra>
// kernel: tpu_custom_call.1
= control target key start
LH: loop header
LB: loop body
LE: loop exit
PB: predicated region body
PF: predicated region fallthrough
CT: control target
= control target key end

     0   :  { %s1106_s0 = inlined_call_operand.hbm [shape: f32[16,32], index: 0, kind: input, shape index: {}]   ;;  %s1107_s1 = inlined_call_operand.hbm [shape: bf16[32,32], index: 1, kind: input, shape index: {}]   ;;  %s1108_s2 = inlined_call_operand.vmem [shape: f32[1,32], index: 2, kind: input, shape index: {}]   ;;  %s1109_s3 = inlined_call_operand.hbm [shape: f32[16,32], index: 3, kind: input, shape index: {}]   ;;  %s1110_s4 = inlined_call_operand.vmem [shape: f32[1,32], index: 4, kind: input, shape index: {}]   ;;  %s1111_s5 = inlined_call_operand.vmem [shape: f32[1,32], index: 5, kind: input, shape index: {}]   ;;  %s1112_s6 = inlined_call_operand.hbm [shape: f32[16,32], index: 6, kind: output, shape index: {}]  }
   0x1   :  { %1118 = sst [smem:[#allocation13_spill]] %s1106_s0 }
   0x2   :  { %1119 = sst [smem:[#allocation14_spill]] %s1109_s3 }
   0x3   :  { %11 = vsyncpa [#allocation3], 0 }
   0x4   :  { %13 = vsyncpa [#allocation3 + $0x1], 0 }
   0x5   :  { %14 = vsyncpa [#allocation6], 0 }
   0x6   :  { %15 = vsyncpa [#allocation4], 0 }
   0x7   :  { %17 = vsyncpa [#allocation4 + $0x1], 0  ;;  %s847_s21 = smov 0   ;;  %s849_s22 = smov 0  }
   0x8   :  { %s851_s23 = smov 0   ;;  %s853_s24 = smov 0  }
   0x9 LB: > { %s868_s25 = sadd.s32 1, %s802_s24   ;;  %s30_s26 = sadd.s32 1, %s798_s23  ;;  %s802_s24 = sphi %s853_s24, %s1139_s24   ;;  %s798_s23 = sphi %s851_s23, %s1138_s23   ;;  %s794_s22 = sphi %s849_s22, %s1137_s22   ;;  %s790_s21 = sphi %s847_s21, %s1136_s21  }
   0xa   : > { %s27_s27 = ssub.s32 %s802_s24, %s868_s25  ;;  %p37_p0 = scmp.ne.s32.totalorder %s798_s23, %s794_s22 }
   0xb   : > { %p28_p1 = scmp.eq.s32.totalorder %s27_s27, 0  ;;  %p38_p2 = scmp.eq.s32.totalorder %s802_s24, 0 }
   0xc   : > { %p596_p4 = scmp.lt.s32.totalorder %s802_s24, 2  ;;  %s225_s29 = sand.u32 1, %s802_s24  }
   0xd   : > { %s879_s28 = scalar_select %p28_p1, %s798_s23, %s30_s26  }
   0xe   : > { %p39_p5 = por %p38_p2, %p37_p0  ;;  %s227_s30 = sand.u32 1, %s798_s23  }
   0xf   : > { %s886_s7 = sshll.u32 %s227_s30, 3  ;;  %s541_s8 = sshll.u32 %s802_s24, 7 }
  0x10   : > { %s1120_s0 = sld [smem:[#allocation13_spill]]  ;;  %s229_s12 = scalar_lea.vmem [#allocation2], %s886_s7 }
  0x11   : > { %s236_s13 = sshll.u32 %s229_s12, 4  ;;  %p897_p6 = pnand %p596_p4, %p39_p5  ;;  %s901_s13 = int_to_ptr.vmem [resolvable:$true] %s236_s13 }
  0x12   : > { %s903_s15 = scalar_lea.sflag [#allocation3], %s225_s29 }
  0x13   : > { %p642_p8 = pneg %p897_p6 }
  0x16   : > { %s894_s11 = scalar_lea.hbm %s1120_s0, %s541_s8  ;;  %s645_s19 = scalar_lea.hbm %s1120_s0, 256 }
  0x17   : > { %s640_s16 = scalar_lea.hbm %s894_s11, 128  ;;  %p646_p11 = scmp.lt.u32.totalorder %s894_s11, %s1120_s0 }
  0x18   : > { %p641_p7 = scmp.ne.s32.totalorder %s894_s11, %s640_s16  ;;  %p647_p12 = scmp.lt.u32.totalorder %s645_s19, %s640_s16 }
  0x19   : > { %p649_p1 = scmp.lt.u32.totalorder %s640_s16, %s894_s11 }
  0x1a   : > { %p643_p9 = pnand %p642_p8, %p641_p7  ;;  %p648_p13 = por %p647_p12, %p646_p11 }
  0x1c   : > { %p644_p10 = pneg %p643_p9  ;;  %p650_p2 = por %p649_p1, %p648_p13 }
  0x1e   : > { %p651_p4 = pnand %p650_p2, %p644_p10 }
  0x20   : > { %654 = shalt.err (!%p651_p4)
}
  0x21   : > { %s655_s27 = scalar_lea.vmem %s901_s13, 128  ;;  %s804_s29 = smov [#allocation2]  }
  0x22   : > { %p656_p5 = scmp.ne.s32.totalorder %s901_s13, %s655_s27  ;;  %s660_s30 = sshll.u32 %s804_s29, 4  ;;  %s661_s30 = int_to_ptr.vmem [resolvable:$false] %s660_s30 }
  0x23   : > { %s662_s9 = scalar_lea.vmem %s661_s30, 256  ;;  %p663_p3 = scmp.lt.s32.totalorder %s901_s13, %s661_s30 }
  0x24   : > { %p658_p7 = pnand %p656_p5, %p642_p8  ;;  %p664_p11 = scmp.lt.s32.totalorder %s662_s9, %s655_s27 }
  0x26   : > { %p659_p9 = pneg %p658_p7  ;;  %p665_p12 = por %p664_p11, %p663_p3 }
  0x28   : > { %p666_p13 = pnand %p665_p12, %p659_p9 }
  0x2a   : > { %669 = shalt.err (!%p666_p13)
}
  0x2b   : > { %587 = dma.hbm_to_vmem [thread:$0]  (!%p897_p6), %s894_s11, 128, %s901_s13, %s903_s15  }
  0x2c   : > { %s932_s10 = sadd.s32 4294967295, %s802_s24   ;;  %s536_s12 = sadd.s32 4294967294, %s802_s24  }
  0x2d   : > { %p43_p3 = scmp.ne.s32.totalorder %s794_s22, %s790_s21  ;;  %p1113_p10 = scmp.eq.s32.totalorder %s932_s10, 0 }
  0x2e   : > { %p177_p1 = scmp.eq.s32.totalorder %s932_s10, 1  ;;  %p183_p2 = scmp.eq.s32.totalorder %s536_s12, 1 }
  0x2f   : > { %p941_p4 = por %p1113_p10, %p43_p3  ;;  %p537_p5 = scmp.ge.s32.totalorder %s802_s24, 1 }
  0x30   : > { %p949_p7 = por %p177_p1, %p37_p0  ;;  %p953_p9 = por %p183_p2, %p43_p3 }
  0x31   : > { %s1122_s16 = scalar_select %p941_p4, 1, 0 }
  0x32   : > { %s1123_s11 = scalar_select %p949_p7, 1, 0 }
  0x33   : > { %s1124_s13 = scalar_select %p953_p9, 1, 0 }
  0x34   : > { %p190_p11 = scmp.lt.s32.totalorder %s802_s24, 3  ;;  %s805_s18 = smov [#allocation5]  }
  0x35   : > { %s202_s19 = sshll.u32 %s805_s18, 4  ;;  %s1126_s3 = sld [smem:[#allocation14_spill]]  ;;  %s972_s19 = int_to_ptr.vmem [resolvable:$true] %s202_s19 }
  0x36   : > { %p958_p12 = pnand %p537_p5, %p190_p11  ;;  %s247_s29 = scalar_lea.vmem [#allocation7], %s886_s7 }
  0x37   : > { %s254_s30 = sshll.u32 %s247_s29, 4  ;;  %s255_s30 = int_to_ptr.vmem [resolvable:$true] %s254_s30 }
  0x38   : > { %s1125_s17 = scalar_select %p958_p12, 1, 0 }
  0x39   : > { %p580_p0 = pneg %p958_p12 }
  0x3b   : > { %s967_s27 = scalar_lea.hbm %s1126_s3, %s541_s8  ;;  %p976_p13 = pnand %p580_p0, %p1113_p10 }
  0x3c   : > { %s670_s12 = scalar_lea.hbm %s967_s27, 128  ;;  %s675_s20 = scalar_lea.hbm %s1126_s3, 256 }
  0x3d   : > { %s1127_s9 = scalar_select %p976_p13, 1, 0 }
  0x3e   : > { %p671_p3 = scmp.ne.s32.totalorder %s967_s27, %s670_s12  ;;  %p676_p5 = scmp.lt.u32.totalorder %s967_s27, %s1126_s3 }
  0x3f   : > { %p677_p11 = scmp.lt.u32.totalorder %s675_s20, %s670_s12  ;;  %p679_p0 = scmp.lt.u32.totalorder %s670_s12, %s967_s27 }
  0x40   : > { %p673_p1 = pnand %p671_p3, %p642_p8 }
  0x41   : > { %p678_p9 = por %p677_p11, %p676_p5 }
  0x42   : > { %p674_p2 = pneg %p673_p1 }
  0x43   : > { %p680_p10 = por %p679_p0, %p678_p9 }
  0x45   : > { %p681_p7 = pnand %p680_p10, %p674_p2 }
  0x47   : > { %684 = shalt.err (!%p681_p7)
}
  0x48   : > { %s685_s29 = scalar_lea.vmem %s255_s30, 128  ;;  %s806_s0 = smov [#allocation7]  }
  0x49   : > { %p686_p4 = scmp.ne.s32.totalorder %s255_s30, %s685_s29  ;;  %s690_s8 = sshll.u32 %s806_s0, 4  ;;  %s691_s8 = int_to_ptr.vmem [resolvable:$false] %s690_s8 }
  0x4a   : > { %s692_s18 = scalar_lea.vmem %s691_s8, 256  ;;  %p693_p12 = scmp.lt.s32.totalorder %s255_s30, %s691_s8 }
  0x4b   : > { %p688_p3 = pnand %p686_p4, %p642_p8  ;;  %p694_p13 = scmp.lt.s32.totalorder %s692_s18, %s685_s29 }
  0x4d   : > { %p689_p1 = pneg %p688_p3  ;;  %p695_p5 = por %p694_p13, %p693_p12 }
  0x4f   : > { %p696_p11 = pnand %p695_p5, %p689_p1 }
  0x51   : > { %699 = shalt.err (!%p696_p11)
}
  0x52   : > { %590 = dma.hbm_to_vmem [thread:$0]  (!%p897_p6), %s967_s27, 128, %s255_s30, %s903_s15  }
  0x53   : > { %s700_s7 = scalar_lea.hbm %s1107_s1, 256  ;;  %p1128_p10 = scmp.ne.s32.totalorder %s1127_s9, 0 }
  0x54   : > { %p701_p8 = scmp.ne.s32.totalorder %s1107_s1, %s700_s7  ;;  %p707_p12 = scmp.lt.u32.totalorder %s700_s7, %s1107_s1 }
  0x55   : > { %p702_p4 = pneg %p1128_p10 }
  0x57   : > { %p703_p7 = pnand %p702_p4, %p701_p8 }
  0x59   : > { %p704_p9 = pneg %p703_p7 }
  0x5b   : > { %p709_p13 = pnand %p707_p12, %p704_p9 }
  0x5d   : > { %712 = shalt.err (!%p709_p13)
}
  0x5e   : > { %s713_s14 = scalar_lea.vmem %s972_s19, 256  ;;  %p721_p3 = scmp.lt.s32.totalorder %s972_s19, %s972_s19 }
  0x5f   : > { %p714_p6 = scmp.ne.s32.totalorder %s972_s19, %s713_s14  ;;  %p722_p1 = scmp.lt.s32.totalorder %s713_s14, %s713_s14 }
  0x61   : > { %p716_p2 = pnand %p714_p6, %p702_p4  ;;  %p723_p5 = por %p722_p1, %p721_p3 }
  0x63   : > { %p717_p0 = pneg %p716_p2 }
  0x65   : > { %p724_p11 = pnand %p723_p5, %p717_p0 }
  0x67   : > { %727 = shalt.err (!%p724_p11)
}
  0x68   : > { %s807_s3 = smov 64   ;;  %s808_s15 = smov 4  }
  0x69   : > { %583 = dma.hbm_to_vmem [thread:$0]  (!%p1128_p10), %s1107_s1, 256, %s972_s19, [#allocation6], %s807_s3, %s807_s3, %s808_s15  }
  0x6a   : > { %p1129_p8 = scmp.ne.s32.totalorder %s1125_s17, 0 }
  0x6b   : > { %s265_s8 = sand.u32 (!%p1129_p8), 1, %s932_s10   ;;  %s267_s18 = sand.u32 (!%p1129_p8), 1, %s794_s22  }
  0x6c   : > { %263 = sbr.rel (%p1129_p8) target bundleno = 533 (0x215), region = 44  ;;  %s1027_s12 = sshll.u32 (!%p1129_p8), %s267_s18, 3 }
  0x6d   : > { %s266_s20 = scalar_lea.sflag (!%p1129_p8), [#allocation3], %s265_s8  ;;  %s269_s7 = scalar_lea.vmem (!%p1129_p8), [#allocation2], %s1027_s12 }
  0x6e   : > { %p1130_p4 = scmp.ne.s32.totalorder (!%p1129_p8), %s1122_s16, 0 }
  0x73   : > { %773 = dma.done.wait (%p1130_p4), %s266_s20, 128  }
  0x74   : > { %775 = vsyncadd (%p1130_p4), %s266_s20, 4294967168  ;;  %p1131_p10 = scmp.eq.s32.totalorder %s932_s10, 0 }
  0x76   : > { %777 = dma.done.wait (%p1131_p10), [#allocation6], 256   ;;  %p1132_p7 = pmov %p1131_p10 }
  0x77   : > { %s282_s17 = scalar_lea.vmem [#allocation7], %s1027_s12 }
  0x78   : > { %779 = vsyncadd (%p1132_p7), [#allocation6], 4294967040 }
  0x79   : > { %781 = dma.done.wait (%p1130_p4), %s266_s20, 128  }
  0x7a   : > { %783 = vsyncadd (%p1130_p4), %s266_s20, 4294967168  ;;  %v809_v0 = vmov 0.0   ;;  %vm810_vm0 = vmmov 0   ;;  %v636_v1 = vld [vmem:[#allocation5] sm:$0xff]   ;;  %v637_v2 = vld [vmem:[#allocation5 + $0x8] sm:$0xff]   ;;  %vm336_vm1 = vcmask 261120  }
  0x7b   : > { %562 = vmatprep.subr.bf16.mxu0 %v809_v0  ;;  %566 = vmatprep.mubr.msk.bf16.mxu0 %vm810_vm0, %v809_v0  ;;  %v317_v3 = vld [vmem:[%s269_s7] sm:$0xff]  ;;  %s556_s14 = sshll.u32 %s932_s10, 7  ;;  %s315_s3 = scalar_lea.vmem [#allocation8], %s1027_s12 }
  0x7c   : > { %563 = vmatpush3.bf16.msra.mxu0 %v636_v1  ;;  %v318_v4 = vpack.c.bf16 %v317_v3, %v317_v3  ;;  %v323_v5 = vld [vmem:[%s282_s17] sm:$0xff]  ;;  %s436_s15 = sshll.u32 %s315_s3, 4  ;;  %s1060_s8 = scalar_lea.hbm %s1112_s6, %s556_s14  ;;  %s1062_s15 = int_to_ptr.vmem [resolvable:$true] %s436_s15 }
  0x7d   : > { %564 = vmatprep.subr.bf16.mxu0 %v809_v0  ;;  %v552_v7 = vld [vmem:[%s1108_s2] ss:$0 sm:$0xff]  ;;  %s423_s20 = scalar_lea.sflag [#allocation4], %s267_s18  ;;  %s728_s7 = scalar_lea.vmem %s1062_s15, 128 }
  0x7e   : > { %v553_v26 = vld [vmem:[%s1110_s4] ss:$0 sm:$0xff]  ;;  %p729_p9 = scmp.ne.s32.totalorder %s1062_s15, %s728_s7  ;;  %p1133_p12 = scmp.ne.s32.totalorder %s1123_s11, 0 }
  0x7f   : > { %v554_v28 = vld [vmem:[%s1111_s5] ss:$0 sm:$0xff]  ;;  %s811_s10 = smov [#allocation8]  }
  0x80   : > { %565 = vmatpush3.bf16.msra.mxu0 %v637_v2  ;;  %p730_p13 = pnand %p729_p9, %p1133_p12  ;;  %s732_s12 = sshll.u32 %s811_s10, 4  ;;  %s733_s12 = int_to_ptr.vmem [resolvable:$false] %s732_s12 }
  0x81   : > { %s734_s17 = scalar_lea.vmem %s733_s12, 256  ;;  %p735_p2 = scmp.lt.s32.totalorder %s1062_s15, %s733_s12 }
  0x82   : > { %p731_p6 = pneg %p730_p13  ;;  %p736_p0 = scmp.lt.s32.totalorder %s734_s17, %s728_s7 }
  0x83   : > { %567 = vmatmul.mubr.msk.bf16.vlgmr.msra.gmra.mrb[0].mxu0 %vm336_vm1, %v318_v4 }
  0x84   : > { %p737_p3 = por %p736_p0, %p735_p2 }
  0x86   : > { %p738_p1 = pnand %p737_p3, %p731_p6 }
 0x156   : > { %v374_v6 = vpop.f32.mrb[0].mxu0 }
 0x157   : > { %v375_v8 = vadd.f32 %v374_v6, %v323_v5  ;;  %v568_v9 = vpop.f32.mrb[1].mxu0 }
 0x158   : > { %v377_v10 = vpop.f32.mrb[2].mxu0 }
 0x159   : > { %v387_v11 = vadd.f32 %v552_v7, %v375_v8  ;;  %v569_v12 = vpop.f32.mrb[3].mxu0 }
 0x15b   : > { %v388_v13 = vsel %vm336_vm1, %v387_v11, 0.0  ;;  %v393_v14 = vmul.f32 %v387_v11, %v387_v11 }
 0x15c   : > { %389 = vadd.xlane.f32.xlu0 %v388_v13 }
 0x15d   : > { %v394_v15 = vsel %vm336_vm1, %v393_v14, 0.0 }
 0x160   : > { %395 = vadd.xlane.f32.xlu0 %v394_v15 }
 0x1e9   : > { %v390_v16 = vpop.xlane.xlu0 %389 }
 0x1ea   : > { %v392_v17 = vmul.f32 0.03125, %v390_v16 }
 0x1ec   : > { %v398_v19 = vmul.f32 %v392_v17, %v392_v17  ;;  %v403_v24 = vsub.f32 %v387_v11, %v392_v17 }
 0x1ed   : > { %v396_v18 = vpop.xlane.xlu0 %395 }
 0x1ee   : > { %v397_v20 = vmul.f32 0.03125, %v396_v18 }
 0x1f0   : > { %v399_v21 = vsub.f32 %v397_v20, %v398_v19 }
 0x1f2   : > { %v400_v22 = vmax.f32 %v399_v21, 0.0 }
 0x1f4   : > { %v401_v23 = vadd.f32 1e-12, %v400_v22 }
 0x1f6   : > { %638 = vrsqrt.f32 %v401_v23 }
 0x200   : > { %v639_v25 = vpop.eup %638 }
 0x201   : > { %v404_v27 = vmul.f32 %v639_v25, %v403_v24 }
 0x203   : > { %v412_v29 = vmul.f32 %v553_v26, %v404_v27 }
 0x205   : > { %v420_v30 = vadd.f32 %v554_v28, %v412_v29 }
 0x207   : > { %421 = vst.msk [vmem:[%s315_s3] sm:$0xff] %vm336_vm1, %v420_v30 }
 0x208   : > { %741 = shalt.err (!%p738_p1)
}
 0x209   : > { %s742_s18 = scalar_lea.hbm %s1060_s8, 128  ;;  %s746_s16 = scalar_lea.hbm %s1112_s6, 256 }
 0x20a   : > { %p743_p5 = scmp.ne.s32.totalorder %s1060_s8, %s742_s18  ;;  %p747_p4 = scmp.lt.u32.totalorder %s1060_s8, %s1112_s6 }
 0x20b   : > { %p748_p10 = scmp.lt.u32.totalorder %s746_s16, %s742_s18  ;;  %p750_p9 = scmp.lt.u32.totalorder %s742_s18, %s1060_s8 }
 0x20c   : > { %p744_p11 = pnand %p743_p5, %p1133_p12 }
 0x20d   : > { %p749_p7 = por %p748_p10, %p747_p4 }
 0x20e   : > { %p745_p8 = pneg %p744_p11 }
 0x20f   : > { %p751_p13 = por %p750_p9, %p749_p7 }
 0x211   : > { %p752_p6 = pnand %p751_p13, %p745_p8 }
 0x213   : > { %755 = shalt.err (!%p752_p6)
}
 0x214   : > { %578 = dma.vmem_to_hbm [thread:$0]  (%p1133_p12), %s1062_s15, 128, %s1060_s8, %s423_s20  }
 0x215 PF: > { %s448_s29 = sand.u32 1, %s790_s21   ;;  %p1134_p2 = scmp.ne.s32.totalorder %s1124_s13, 0 }
 0x216   : > { %p1135_p0 = scmp.ge.s32.totalorder %s802_s24, 2  ;;  %s449_s14 = scalar_lea.sflag [#allocation4], %s448_s29 }
 0x218   : > { %p592_p3 = pnand %p1135_p0, %p1134_p2 }
 0x21a   : > { %785 = dma.done.wait (!%p592_p3), %s449_s14, 128  }
 0x21b   : > { %787 = vsyncadd (!%p592_p3), %s449_s14, 4294967168  ;;  %p20_p1 = scmp.ge.s32.totalorder %s868_s25, 4   ;;  %s1136_s21 = smov %s794_s22 }
 0x21c   : > { %s1137_s22 = smov %s798_s23  ;;  %s1138_s23 = smov %s879_s28 }
 0x21d   : > { %s1139_s24 = smov %s868_s25  ;;  %22 = sbr.rel (!%p20_p1) target bundleno = 9 (0x9), region = 104 }
 0x224   :  { %454 = vsyncpa [#allocation3], 1 }
 0x225   :  { %456 = vsyncpa [#allocation3 + $0x1], 1 }
 0x226   :  { %457 = vsyncpa [#allocation6], 1 }
 0x227   :  { %458 = vsyncpa [#allocation4], 1 }
 0x228   :  { %460 = vsyncpa [#allocation4 + $0x1], 1 }

</bundles_post_ra>
